<compile_context>
chip_gen: v7x
topology: tpu7x:2x2x1
jax: 0.10.0
libtpu: 0.0.40
codegen_flags: <defaults>
</compile_context>

<pallas_src>
import functools

import jax
import jax.numpy as jnp
from jax import lax
from jax.experimental import pallas as pl
from jax.experimental.pallas import tpu as pltpu

P_VALUE = 2
SMOOTH = 10.0

LANES = 128
FOLD = 64                      # accumulator rows / strip size (covers f32/bf16/int8 packing)
TARGET_BLOCK_BYTES = 2 << 20   # input bytes per operand per grid step


def _num_tensorcores():
    """2 TensorCores per chip on v7x, 1 on v5e/v6e (conservative default 1)."""
    try:
        kind = jax.devices()[0].device_kind.lower()
    except Exception:
        return 1
    return 2 if ("v7" in kind or "7x" in kind) else 1


def _power_jaccard_kernel(pred_ref, true_ref, out_ref, *, p_value, rows,
                          block_rows, blocks_per_core, num_cores, mask_tail):
    """Grid = (core, row_block).

    out_ref is the per-core (1, nsums, FOLD, 128) partial-sum slab; it is
    VMEM-resident across the row_block axis and used directly as the
    accumulator.  Cross-lane reduction + the loss formula run in the wrapper
    on a tiny array (no SMEM scalar RMW chain on the hot path)."""
    c = pl.program_id(0)
    b = pl.program_id(1)
    lin = c * blocks_per_core + b if num_cores > 1 else b

    nsums = 2 if p_value == 2 else 3
    n_strips = block_rows // FOLD

    @pl.when(b == 0)
    def _init():
        out_ref[...] = jnp.zeros_like(out_ref)

    def accumulate(masked):
        def strip(s, carry):
            off = pl.multiple_of(s * FOLD, FOLD)
            yp = pred_ref[pl.ds(off, FOLD), :].astype(jnp.float32)
            yt = true_ref[pl.ds(off, FOLD), :].astype(jnp.float32)
            if masked:
                row0 = lin * block_rows + off
                gids = row0 + lax.broadcasted_iota(jnp.int32, (FOLD, LANES), 0)
                valid = gids < rows
                yp = jnp.where(valid, yp, 0.0)
                yt = jnp.where(valid, yt, 0.0)
            if p_value == 2:
                diff = yt - yp
                return (carry[0] + yt * yp, carry[1] + diff * diff)
            return (carry[0] + yt * yp,
                    carry[1] + yt ** p_value,
                    carry[2] + yp ** p_value)

        init = tuple(jnp.zeros((FOLD, LANES), jnp.float32)
                     for _ in range(nsums))
        sums = lax.fori_loop(0, n_strips, strip, init,
                             unroll=min(4, n_strips))
        for i in range(nsums):
            out_ref[0, i] += sums[i]

    if mask_tail:
        # Only the ragged last real block per core and any clamped duplicate
        # blocks past the end of the array need masking; all full blocks take
        # the unmasked fast path (no extra VPU work in the steady state).
        needs_mask = (lin + 1) * block_rows > rows

        @pl.when(jnp.logical_not(needs_mask))
        def _full_blocks():
            accumulate(masked=False)

        @pl.when(needs_mask)
        def _tail_block():
            accumulate(masked=True)
    else:
        accumulate(masked=False)


def power_jaccard(inputs, targets, p_value=P_VALUE, smooth=SMOOTH):
    """Pallas implementation of PowerJaccard.forward(inputs, targets)."""
    assert inputs.shape == targets.shape, "inputs/targets must match in shape"

    pred_flat = inputs.reshape(-1)    # keep original dtype; cast in-kernel
    true_flat = targets.reshape(-1)
    n = pred_flat.shape[0]

    # Only pad when the element count is not a multiple of 128 (rare for NN
    # tensors); zero padding contributes nothing to any of the sums.
    rem = n % LANES
    if rem:
        pad = LANES - rem
        pred_flat = jnp.pad(pred_flat, (0, pad))
        true_flat = jnp.pad(true_flat, (0, pad))
    rows = pred_flat.shape[0] // LANES

    pred2d = pred_flat.reshape(rows, LANES)   # free bitcast (contiguous)
    true2d = true_flat.reshape(rows, LANES)

    num_cores = _num_tensorcores()

    # Dtype-aware block sizing: ~TARGET_BLOCK_BYTES of input per operand per
    # grid step, rounded to FOLD-row granularity.
    itemsize = inputs.dtype.itemsize
    tile_rows = max(FOLD,
                    (TARGET_BLOCK_BYTES // (LANES * itemsize)) // FOLD * FOLD)
    block_rows = min(tile_rows, pl.cdiv(rows, FOLD) * FOLD)
    n_blocks = pl.cdiv(rows, block_rows)
    blocks_per_core = pl.cdiv(n_blocks, num_cores)
    mask_tail = num_cores * blocks_per_core * block_rows > rows

    nsums = 2 if p_value == 2 else 3

    if num_cores > 1:
        # Clamp the block index so no block starts past the end of the array;
        # duplicated / ragged data is zeroed by the in-kernel tail mask.
        max_blk = n_blocks - 1

        def in_map(c, b):
            return (jnp.minimum(c * blocks_per_core + b, max_blk), 0)

        # Triple buffer on v7x to absorb DMA jitter (per-step compute ~ DMA).
        in_spec = pl.BlockSpec((block_rows, LANES), in_map,
                               pipeline_mode=pl.Buffered(3))
        dim_sem = (pltpu.CORE_PARALLEL, pltpu.ARBITRARY)
    else:
        def in_map(c, b):
            return (b, 0)

        in_spec = pl.BlockSpec((block_rows, LANES), in_map)
        dim_sem = (pltpu.ARBITRARY, pltpu.ARBITRARY)

    kernel = functools.partial(
        _power_jaccard_kernel,
        p_value=p_value, rows=rows, block_rows=block_rows,
        blocks_per_core=blocks_per_core, num_cores=num_cores,
        mask_tail=mask_tail)

    partials = pl.pallas_call(
        kernel,
        out_shape=jax.ShapeDtypeStruct((num_cores, nsums, FOLD, LANES),
                                       jnp.float32),
        grid_spec=pltpu.PrefetchScalarGridSpec(
            num_scalar_prefetch=0,
            grid=(num_cores, blocks_per_core),
            in_specs=[in_spec, in_spec],
            out_specs=pl.BlockSpec((1, nsums, FOLD, LANES),
                                   lambda c, b: (c, 0, 0, 0)),
        ),
        compiler_params=pltpu.CompilerParams(dimension_semantics=dim_sem),
    )(pred2d, true2d)

    # Combine per-core / per-lane partials (tiny array) and apply the formula.
    sums = jnp.sum(partials, axis=(0, 2, 3))
    intersection = sums[0]
    if p_value == 2:
        union = sums[1] + intersection          # sum((yt-yp)^2) + intersection
    else:
        union = sums[1] + sums[2] - intersection
    return 1.0 - (intersection + float(smooth)) / (union + float(smooth))


def _reference(inputs, targets, p_value=P_VALUE, smooth=SMOOTH):
    yt = targets.reshape(-1).astype(jnp.float32)
    yp = inputs.reshape(-1).astype(jnp.float32)
    intersection = jnp.sum(yt * yp)
    union = jnp.sum(yt ** p_value) + jnp.sum(yp ** p_value) - intersection
    return 1.0 - (intersection + smooth) / (union + smooth)


if __name__ == "__main__":
    key = jax.random.PRNGKey(0)
    k1, k2 = jax.random.split(key)

    # NCHW-shaped example inputs (prediction probabilities and binary targets)
    shape = (2, 4, 16, 16)
    inputs = jax.nn.sigmoid(jax.random.normal(k1, shape, dtype=jnp.float32))
    targets = (jax.random.uniform(k2, shape) > 0.5).astype(jnp.float32)

    loss = power_jaccard(inputs, targets)
    loss = jax.block_until_ready(loss)

    ref = _reference(inputs, targets)
    assert jnp.allclose(loss, ref, rtol=1e-5, atol=1e-5), (loss, ref)

    print("KERNEL_OK")
</pallas_src>

<mosaic_0001>
module attributes {stable_mosaic.version = 11 : i64} {
  func.func @_power_jaccard_kernel(%arg0: i32, %arg1: i32, %arg2: memref<64x128xf32, #tpu.memory_space<vmem>>, %arg3: memref<64x128xf32, #tpu.memory_space<vmem>>, %arg4: memref<1x2x64x128xf32, #tpu.memory_space<vmem>>) attributes {dimension_semantics = [#tpu.dimension_semantics<arbitrary>, #tpu.dimension_semantics<arbitrary>], iteration_bounds = array<i64: 1, 1>, scalar_prefetch = 0 : i64, scratch_operands = 0 : i64, tpu.core_type = #tpu.core_type<tc>, window_params = [{transform_indices = @transform_0, window_bounds = array<i64: 64, 128>}, {transform_indices = @transform_1, window_bounds = array<i64: 64, 128>}, {transform_indices = @transform_2, window_bounds = array<i64: 1, 2, 64, 128>}]} {
    %c0_i32 = arith.constant 0 : i32
    %0 = arith.cmpi eq, %arg1, %c0_i32 : i32
    %1 = arith.extui %0 : i1 to i32
    %c0_i32_0 = arith.constant 0 : i32
    %2 = arith.cmpi ne, %1, %c0_i32_0 : i32
    scf.if %2 {
      %cst = arith.constant 0.000000e+00 : f32
      %11 = vector.broadcast %cst : f32 to vector<1x2x64x128xf32>
      %c0 = arith.constant 0 : index
      %c0_3 = arith.constant 0 : index
      %c0_4 = arith.constant 0 : index
      %c0_5 = arith.constant 0 : index
      %12 = vector.load %arg4[%c0, %c0_3, %c0_4, %c0_5] : memref<1x2x64x128xf32, #tpu.memory_space<vmem>>, vector<1x2x64x128xf32>
      tpu.vector_store %arg4[%c0, %c0_3, %c0_4, %c0_5], %11 {strides = array<i32>} : memref<1x2x64x128xf32, #tpu.memory_space<vmem>>, vector<1x2x64x128xf32>,
    } else {
    }
    %c1_i32 = arith.constant 1 : i32
    %3 = arith.addi %arg1, %c1_i32 : i32
    %c64_i32 = arith.constant 64 : i32
    %4 = arith.muli %3, %c64_i32 : i32
    %c16_i32 = arith.constant 16 : i32
    %5 = arith.cmpi sgt, %4, %c16_i32 : i32
    %true = arith.constant true
    %6 = arith.xori %5, %true : i1
    %7 = arith.extui %6 : i1 to i32
    %c0_i32_1 = arith.constant 0 : i32
    %8 = arith.cmpi ne, %7, %c0_i32_1 : i32
    scf.if %8 {
      %cst = arith.constant 0.000000e+00 : f32
      %11 = vector.broadcast %cst : f32 to vector<64x128xf32>
      %cst_3 = arith.constant 0.000000e+00 : f32
      %12 = vector.broadcast %cst_3 : f32 to vector<64x128xf32>
      %c0_i32_4 = arith.constant 0 : i32
      %c64_i32_5 = arith.constant 64 : i32
      %13 = arith.muli %c0_i32_4, %c64_i32_5 : i32
      %14 = tpu.assume_multiple %13, 64 : i32
      %15 = arith.index_cast %14 : i32 to index
      %c0 = arith.constant 0 : index
      %16 = vector.load %arg2[%15, %c0] : memref<64x128xf32, #tpu.memory_space<vmem>>, vector<64x128xf32>
      %17 = arith.index_cast %14 : i32 to index
      %c0_6 = arith.constant 0 : index
      %18 = vector.load %arg3[%17, %c0_6] : memref<64x128xf32, #tpu.memory_space<vmem>>, vector<64x128xf32>
      %19 = arith.subf %18, %16 : vector<64x128xf32>
      %20 = arith.mulf %18, %16 : vector<64x128xf32>
      %21 = arith.addf %11, %20 : vector<64x128xf32>
      %22 = arith.mulf %19, %19 : vector<64x128xf32>
      %23 = arith.addf %12, %22 : vector<64x128xf32>
      %c1_i32_7 = arith.constant 1 : i32
      %c0_8 = arith.constant 0 : index
      %c0_9 = arith.constant 0 : index
      %c0_10 = arith.constant 0 : index
      %c0_11 = arith.constant 0 : index
      %24 = vector.load %arg4[%c0_8, %c0_9, %c0_10, %c0_11] : memref<1x2x64x128xf32, #tpu.memory_space<vmem>>, vector<1x1x64x128xf32>
      %25 = vector.shape_cast %24 : vector<1x1x64x128xf32> to vector<64x128xf32>
      %26 = arith.addf %25, %21 : vector<64x128xf32>
      %c0_12 = arith.constant 0 : index
      %c0_13 = arith.constant 0 : index
      %c0_14 = arith.constant 0 : index
      %c0_15 = arith.constant 0 : index
      %27 = vector.load %arg4[%c0_12, %c0_13, %c0_14, %c0_15] : memref<1x2x64x128xf32, #tpu.memory_space<vmem>>, vector<1x1x64x128xf32>
      %28 = vector.shape_cast %27 : vector<1x1x64x128xf32> to vector<64x128xf32>
      %29 = vector.shape_cast %26 : vector<64x128xf32> to vector<1x1x64x128xf32>
      tpu.vector_store %arg4[%c0_12, %c0_13, %c0_14, %c0_15], %29 {strides = array<i32>} : memref<1x2x64x128xf32, #tpu.memory_space<vmem>>, vector<1x1x64x128xf32>,
      %c0_16 = arith.constant 0 : index
      %c1 = arith.constant 1 : index
      %c0_17 = arith.constant 0 : index
      %c0_18 = arith.constant 0 : index
      %30 = vector.load %arg4[%c0_16, %c1, %c0_17, %c0_18] : memref<1x2x64x128xf32, #tpu.memory_space<vmem>>, vector<1x1x64x128xf32>
      %31 = vector.shape_cast %30 : vector<1x1x64x128xf32> to vector<64x128xf32>
      %32 = arith.addf %31, %23 : vector<64x128xf32>
      %c0_19 = arith.constant 0 : index
      %c1_20 = arith.constant 1 : index
      %c0_21 = arith.constant 0 : index
      %c0_22 = arith.constant 0 : index
      %33 = vector.load %arg4[%c0_19, %c1_20, %c0_21, %c0_22] : memref<1x2x64x128xf32, #tpu.memory_space<vmem>>, vector<1x1x64x128xf32>
      %34 = vector.shape_cast %33 : vector<1x1x64x128xf32> to vector<64x128xf32>
      %35 = vector.shape_cast %32 : vector<64x128xf32> to vector<1x1x64x128xf32>
      tpu.vector_store %arg4[%c0_19, %c1_20, %c0_21, %c0_22], %35 {strides = array<i32>} : memref<1x2x64x128xf32, #tpu.memory_space<vmem>>, vector<1x1x64x128xf32>,
    } else {
    }
    %9 = arith.extui %5 : i1 to i32
    %c0_i32_2 = arith.constant 0 : i32
    %10 = arith.cmpi ne, %9, %c0_i32_2 : i32
    scf.if %10 {
      %cst = arith.constant 0.000000e+00 : f32
      %11 = vector.broadcast %cst : f32 to vector<64x128xf32>
      %cst_3 = arith.constant 0.000000e+00 : f32
      %12 = vector.broadcast %cst_3 : f32 to vector<64x128xf32>
      %c0_i32_4 = arith.constant 0 : i32
      %c64_i32_5 = arith.constant 64 : i32
      %13 = arith.muli %c0_i32_4, %c64_i32_5 : i32
      %14 = tpu.assume_multiple %13, 64 : i32
      %15 = arith.index_cast %14 : i32 to index
      %c0 = arith.constant 0 : index
      %16 = vector.load %arg2[%15, %c0] : memref<64x128xf32, #tpu.memory_space<vmem>>, vector<64x128xf32>
      %17 = arith.index_cast %14 : i32 to index
      %c0_6 = arith.constant 0 : index
      %18 = vector.load %arg3[%17, %c0_6] : memref<64x128xf32, #tpu.memory_space<vmem>>, vector<64x128xf32>
      %c64_i32_7 = arith.constant 64 : i32
      %19 = arith.muli %arg1, %c64_i32_7 : i32
      %20 = arith.addi %19, %14 : i32
      %21 = tpu.iota {dimensions = array<i32: 0>} : vector<64x128xi32>
      %22 = vector.broadcast %20 : i32 to vector<64x128xi32>
      %23 = arith.addi %22, %21 : vector<64x128xi32>
      %c16_i32_8 = arith.constant 16 : i32
      %24 = vector.broadcast %c16_i32_8 : i32 to vector<64x128xi32>
      %25 = arith.cmpi slt, %23, %24 : vector<64x128xi32>
      %cst_9 = arith.constant 0.000000e+00 : f32
      %26 = vector.broadcast %cst_9 : f32 to vector<64x128xf32>
      %27 = arith.select %25, %16, %26 : vector<64x128xi1>, vector<64x128xf32>
      %cst_10 = arith.constant 0.000000e+00 : f32
      %28 = vector.broadcast %cst_10 : f32 to vector<64x128xf32>
      %29 = arith.select %25, %18, %28 : vector<64x128xi1>, vector<64x128xf32>
      %30 = arith.subf %29, %27 : vector<64x128xf32>
      %31 = arith.mulf %29, %27 : vector<64x128xf32>
      %32 = arith.addf %11, %31 : vector<64x128xf32>
      %33 = arith.mulf %30, %30 : vector<64x128xf32>
      %34 = arith.addf %12, %33 : vector<64x128xf32>
      %c1_i32_11 = arith.constant 1 : i32
      %c0_12 = arith.constant 0 : index
      %c0_13 = arith.constant 0 : index
      %c0_14 = arith.constant 0 : index
      %c0_15 = arith.constant 0 : index
      %35 = vector.load %arg4[%c0_12, %c0_13, %c0_14, %c0_15] : memref<1x2x64x128xf32, #tpu.memory_space<vmem>>, vector<1x1x64x128xf32>
      %36 = vector.shape_cast %35 : vector<1x1x64x128xf32> to vector<64x128xf32>
      %37 = arith.addf %36, %32 : vector<64x128xf32>
      %c0_16 = arith.constant 0 : index
      %c0_17 = arith.constant 0 : index
      %c0_18 = arith.constant 0 : index
      %c0_19 = arith.constant 0 : index
      %38 = vector.load %arg4[%c0_16, %c0_17, %c0_18, %c0_19] : memref<1x2x64x128xf32, #tpu.memory_space<vmem>>, vector<1x1x64x128xf32>
      %39 = vector.shape_cast %38 : vector<1x1x64x128xf32> to vector<64x128xf32>
      %40 = vector.shape_cast %37 : vector<64x128xf32> to vector<1x1x64x128xf32>
      tpu.vector_store %arg4[%c0_16, %c0_17, %c0_18, %c0_19], %40 {strides = array<i32>} : memref<1x2x64x128xf32, #tpu.memory_space<vmem>>, vector<1x1x64x128xf32>,
      %c0_20 = arith.constant 0 : index
      %c1 = arith.constant 1 : index
      %c0_21 = arith.constant 0 : index
      %c0_22 = arith.constant 0 : index
      %41 = vector.load %arg4[%c0_20, %c1, %c0_21, %c0_22] : memref<1x2x64x128xf32, #tpu.memory_space<vmem>>, vector<1x1x64x128xf32>
      %42 = vector.shape_cast %41 : vector<1x1x64x128xf32> to vector<64x128xf32>
      %43 = arith.addf %42, %34 : vector<64x128xf32>
      %c0_23 = arith.constant 0 : index
      %c1_24 = arith.constant 1 : index
      %c0_25 = arith.constant 0 : index
      %c0_26 = arith.constant 0 : index
      %44 = vector.load %arg4[%c0_23, %c1_24, %c0_25, %c0_26] : memref<1x2x64x128xf32, #tpu.memory_space<vmem>>, vector<1x1x64x128xf32>
      %45 = vector.shape_cast %44 : vector<1x1x64x128xf32> to vector<64x128xf32>
      %46 = vector.shape_cast %43 : vector<64x128xf32> to vector<1x1x64x128xf32>
      tpu.vector_store %arg4[%c0_23, %c1_24, %c0_25, %c0_26], %46 {strides = array<i32>} : memref<1x2x64x128xf32, #tpu.memory_space<vmem>>, vector<1x1x64x128xf32>,
    } else {
    }
    return
  }
  func.func @transform_0(%arg0: i32, %arg1: i32) -> (i32, i32) {
    %c0_i32 = arith.constant 0 : i32
    %c0_i32_0 = arith.constant 0 : i32
    return %arg1, %c0_i32 : i32, i32
  }
  func.func @transform_1(%arg0: i32, %arg1: i32) -> (i32, i32) {
    %c0_i32 = arith.constant 0 : i32
    %c0_i32_0 = arith.constant 0 : i32
    return %arg1, %c0_i32 : i32, i32
  }
  func.func @transform_2(%arg0: i32, %arg1: i32) -> (i32, i32, i32, i32) {
    %c0_i32 = arith.constant 0 : i32
    %c0_i32_0 = arith.constant 0 : i32
    %c0_i32_1 = arith.constant 0 : i32
    %c0_i32_2 = arith.constant 0 : i32
    return %arg0, %c0_i32, %c0_i32_0, %c0_i32_1 : i32, i32, i32, i32
  }
}

</mosaic_0001>

<bundles_post_ra>
// kernel: tpu_custom_call.1
= control target key start
LH: loop header
LB: loop body
LE: loop exit
PB: predicated region body
PF: predicated region fallthrough
CT: control target
= control target key end

     0   :  { %7 = vsyncpa [#allocation3], 0  ;;  %s486_s0 = inlined_call_operand.hbm [shape: f32[16,128], index: 0, kind: input, shape index: {}]   ;;  %s487_s1 = inlined_call_operand.hbm [shape: f32[16,128], index: 1, kind: input, shape index: {}]   ;;  %s488_s2 = inlined_call_operand.hbm [shape: f32[1,2,64,128], index: 2, kind: output, shape index: {}]  }
   0x1   :  { %8 = vsyncpa [#allocation6], 0 }
   0x2   :  { %9 = vsyncpa [#allocation4], 0 }
   0x3   :  { %14 = vsyncadd [#allocation3], 768  ;;  %s420_s9 = smov [#allocation2]   ;;  %s348_s13 = scalar_lea.hbm %s486_s0, 256 }
   0x4   :  { %s15_s10 = sshll.u32 %s420_s9, 4  ;;  %p349_p0 = scmp.ne.s32.totalorder %s486_s0, %s348_s13  ;;  %s16_s10 = int_to_ptr.vmem [resolvable:$true] %s15_s10 }
   0x5   :  { %p352_p1 = scmp.lt.u32.totalorder %s348_s13, %s486_s0 }
   0x7   :  { %p354_p2 = pnand %p352_p1, %p349_p0 }
   0x9   :  { %357 = shalt.err (!%p354_p2)
}
   0xa   :  { %s358_s18 = scalar_lea.vmem %s16_s10, 256  ;;  %s362_s19 = scalar_lea.vmem %s16_s10, 1024 }
   0xb   :  { %p359_p3 = scmp.ne.s32.totalorder %s16_s10, %s358_s18  ;;  %p363_p4 = scmp.lt.s32.totalorder %s16_s10, %s16_s10 }
   0xc   :  { %p364_p5 = scmp.lt.s32.totalorder %s362_s19, %s358_s18 }
   0xe   :  { %p365_p6 = por %p364_p5, %p363_p4 }
  0x10   :  { %p366_p7 = pnand %p365_p6, %p359_p3 }
  0x12   :  { %369 = shalt.err (!%p366_p7)
}
  0x13   :  { %s421_s20 = smov 128   ;;  %s422_s21 = smov 8  }
  0x14   :  { %21 = dma.hbm_to_vmem [thread:$0]  %s486_s0, 256, %s16_s10, [#allocation3], %s421_s20, %s421_s20, %s422_s21  }
  0x15   :  { %26 = vsyncadd [#allocation6], 768  ;;  %s423_s24 = smov [#allocation5]   ;;  %s370_s28 = scalar_lea.hbm %s487_s1, 256 }
  0x16   :  { %s27_s25 = sshll.u32 %s423_s24, 4  ;;  %p371_p8 = scmp.ne.s32.totalorder %s487_s1, %s370_s28  ;;  %s28_s25 = int_to_ptr.vmem [resolvable:$true] %s27_s25 }
  0x17   :  { %p374_p9 = scmp.lt.u32.totalorder %s370_s28, %s487_s1 }
  0x19   :  { %p376_p10 = pnand %p374_p9, %p371_p8 }
  0x1b   :  { %379 = shalt.err (!%p376_p10)
}
  0x1c   :  { %s380_s5 = scalar_lea.vmem %s28_s25, 256  ;;  %s384_s0 = scalar_lea.vmem %s28_s25, 1024 }
  0x1d   :  { %p381_p11 = scmp.ne.s32.totalorder %s28_s25, %s380_s5  ;;  %p385_p12 = scmp.lt.s32.totalorder %s28_s25, %s28_s25 }
  0x1e   :  { %p386_p13 = scmp.lt.s32.totalorder %s384_s0, %s380_s5 }
  0x20   :  { %p387_p0 = por %p386_p13, %p385_p12 }
  0x22   :  { %p388_p1 = pnand %p387_p0, %p381_p11 }
  0x24   :  { %391 = shalt.err (!%p388_p1)
}
  0x25   :  { %33 = dma.hbm_to_vmem [thread:$0]  %s487_s1, 256, %s28_s25, [#allocation6], %s421_s20, %s421_s20, %s422_s21  }
  0x26   :  { %414 = dma.done.wait [#allocation3], 1024  }
  0x27   :  { %415 = vsyncadd [#allocation3], 4294966272 }
  0x28   :  { %416 = dma.done.wait [#allocation6], 1024  }
  0x29   :  { %417 = vsyncadd [#allocation6], 4294966272  ;;  %v424_v0 = vmov 0.0   ;;  %v175_v1 = vld [vmem:[#allocation2] sm:$0xff]  ;;  %v176_v3 = vld [vmem:[#allocation2 + $0x8] sm:$0xff]  ;;  %s425_s1 = smov [#allocation7]  }
  0x2a   :  { %293 = vst [vmem:[#allocation7 + $0x10] sm:$0xff] %v424_v0  ;;  %294 = vst [vmem:[#allocation7 + $0x18] sm:$0xff] %v424_v0  ;;  %v183_v2 = vld [vmem:[#allocation5] sm:$0xff]  ;;  %v184_v5 = vld [vmem:[#allocation5 + $0x8] sm:$0xff]  ;;  %s329_s8 = sshll.u32 %s425_s1, 4  ;;  %s330_s8 = int_to_ptr.vmem [resolvable:$true] %s329_s8 }
  0x2b   :  { %295 = vst [vmem:[#allocation7 + $0x20] sm:$0xff] %v424_v0  ;;  %296 = vst [vmem:[#allocation7 + $0x28] sm:$0xff] %v424_v0  ;;  %v243_v4 = vmul.f32 %v183_v2, %v175_v1  ;;  %v235_v6 = vsub.f32 %v183_v2, %v175_v1  ;;  %v244_v7 = vmul.f32 %v184_v5, %v176_v3  ;;  %s392_s9 = scalar_lea.vmem %s330_s8, 2048  ;;  %p397_p3 = scmp.lt.s32.totalorder %s330_s8, %s330_s8 }
  0x2c   :  { %297 = vst [vmem:[#allocation7 + $0x30] sm:$0xff] %v424_v0  ;;  %298 = vst [vmem:[#allocation7 + $0x38] sm:$0xff] %v424_v0  ;;  %v236_v8 = vsub.f32 %v184_v5, %v176_v3  ;;  %p393_p2 = scmp.ne.s32.totalorder %s330_s8, %s392_s9  ;;  %p398_p4 = scmp.lt.s32.totalorder %s392_s9, %s392_s9 }
  0x2d   :  { %318 = vst [vmem:[#allocation7 + $0x50] sm:$0xff] %v424_v0  ;;  %319 = vst [vmem:[#allocation7 + $0x58] sm:$0xff] %v424_v0  ;;  %v259_v9 = vmul.f32 %v235_v6, %v235_v6 }
  0x2e   :  { %320 = vst [vmem:[#allocation7 + $0x60] sm:$0xff] %v424_v0  ;;  %321 = vst [vmem:[#allocation7 + $0x68] sm:$0xff] %v424_v0  ;;  %v260_v10 = vmul.f32 %v236_v8, %v236_v8  ;;  %p399_p5 = por %p398_p4, %p397_p3 }
  0x2f   :  { %322 = vst [vmem:[#allocation7 + $0x70] sm:$0xff] %v424_v0  ;;  %323 = vst [vmem:[#allocation7 + $0x78] sm:$0xff] %v424_v0 }
  0x30   :  { %291 = vst [vmem:[#allocation7] sm:$0xff] %v243_v4  ;;  %292 = vst [vmem:[#allocation7 + $0x8] sm:$0xff] %v244_v7  ;;  %p400_p6 = pnand %p399_p5, %p393_p2 }
  0x31   :  { %316 = vst [vmem:[#allocation7 + $0x40] sm:$0xff] %v259_v9  ;;  %317 = vst [vmem:[#allocation7 + $0x48] sm:$0xff] %v260_v10 }
  0x32   :  { %403 = shalt.err (!%p400_p6)
}
  0x33   :  { %s404_s12 = scalar_lea.hbm %s488_s2, 2048 }
  0x34   :  { %p405_p7 = scmp.ne.s32.totalorder %s488_s2, %s404_s12  ;;  %p408_p8 = scmp.lt.u32.totalorder %s404_s12, %s488_s2 }
  0x36   :  { %p410_p9 = pnand %p408_p8, %p405_p7 }
  0x38   :  { %413 = shalt.err (!%p410_p9)
}
  0x39   :  { %335 = dma.vmem_to_hbm [thread:$0]  %s330_s8, 2048, %s488_s2, [#allocation4], %s421_s20, %s421_s20, %s422_s21  }
  0x3a   :  { %418 = dma.done.wait [#allocation4], 2048  }
  0x3b   :  { %419 = vsyncadd [#allocation4], 4294965248 }
  0x3c   :  { %339 = vsyncpa [#allocation3], 1 }
  0x3d   :  { %340 = vsyncpa [#allocation6], 1 }
  0x3e   :  { %341 = vsyncpa [#allocation4], 1 }

</bundles_post_ra>
